<compile_context>
chip_gen: v7x
topology: tpu7x:2x2x1
jax: 0.10.0
libtpu: 0.0.40
codegen_flags: <defaults>
</compile_context>

<pallas_src>
import functools

import jax
import jax.numpy as jnp
from jax.experimental import pallas as pl
from jax.experimental.pallas import tpu as pltpu

LANE = 128


def _round_up(x, m):
    return (x + m - 1) // m * m


def _make_decoder_kernel(activations):
    """Builds the fused decoder kernel for a fixed (static) layer structure."""
    n_layers = len(activations)

    def kernel(mu_ref, logvar_ref, eps_ref, *refs):
        # refs = (w1, b1, ..., w_common, b_common, out_ref); weights bf16, biases f32.
        out_ref = refs[-1]
        p_refs = refs[:-1]

        # --- Sampler: reparameterization trick (f32 on VPU/EUP) ---
        h = mu_ref[...] + jnp.exp(0.5 * logvar_ref[...]) * eps_ref[...]

        # --- BNN layers: bf16 MXU matmul, f32 accumulate, f32 activation ---
        for i in range(n_layers):
            w = p_refs[2 * i][...]               # bf16 [Din_pad, Dout_pad]
            b = p_refs[2 * i + 1][...]           # f32  [1, Dout_pad]
            h = jnp.dot(h.astype(jnp.bfloat16), w,
                        preferred_element_type=jnp.float32) + b
            act = activations[i]
            if act == "relu":
                h = jnp.maximum(h, 0.0)
            elif act == "tanh":
                h = jnp.tanh(h)
            elif act == "sigmoid":
                h = jax.nn.sigmoid(h)
            # "linear"/None -> identity

        # --- decoder_common: Linear + sigmoid head ---
        wc = p_refs[2 * n_layers][...]
        bc = p_refs[2 * n_layers + 1][...]
        logits = jnp.dot(h.astype(jnp.bfloat16), wc,
                         preferred_element_type=jnp.float32) + bc
        out_ref[...] = jax.nn.sigmoid(logits).astype(out_ref.dtype)

    return kernel


@functools.partial(
    jax.jit, static_argnames=("latent_dim", "activations", "out_dim", "tm"))
def decoder_forward(x, eps, padded_params, *, latent_dim, activations,
                    out_dim, tm=512):
    """x: [B, 2*latent], eps: [B, latent], padded_params: 128-padded (w,b) tuple."""
    batch = x.shape[0]
    n_layers = len(activations)

    # Split mu / logvar in the wrapper (free XLA slice, lane-dense kernel inputs).
    mu = x[:, :latent_dim].astype(jnp.float32)
    logvar = x[:, latent_dim:].astype(jnp.float32)

    lat_pad = _round_up(latent_dim, LANE)
    out_pad = padded_params[-1].shape[-1]

    # Batch tile: multiple of 8 sublanes, capped by (padded) batch.
    tm = _round_up(tm, 8)
    tm_eff = min(tm, _round_up(batch, 8))
    b_pad = _round_up(batch, tm_eff)
    grid = (b_pad // tm_eff,)

    def pad2(a, rows, cols):
        return jnp.pad(a, ((0, rows - a.shape[0]), (0, cols - a.shape[1])))

    mu_p = pad2(mu, b_pad, lat_pad)
    logvar_p = pad2(logvar, b_pad, lat_pad)
    eps_p = pad2(eps.astype(jnp.float32), b_pad, lat_pad)

    kernel = _make_decoder_kernel(activations)

    act_spec = lambda: pl.BlockSpec((tm_eff, lat_pad), lambda i: (i, 0))
    in_specs = [act_spec(), act_spec(), act_spec()]
    for p in padded_params:
        # Weights/biases: same block every grid step -> DMA'd once, VMEM-resident.
        in_specs.append(pl.BlockSpec(p.shape, lambda i: (0, 0)))
    out_specs = pl.BlockSpec((tm_eff, out_pad), lambda i: (i, 0))

    # Advisory cost estimate for XLA scheduling around the custom call.
    dims = [lat_pad] + [padded_params[2 * i].shape[1] for i in range(n_layers)] + [out_pad]
    flops = 2 * b_pad * sum(dims[i] * dims[i + 1] for i in range(len(dims) - 1))
    transcendentals = b_pad * (lat_pad + out_pad)  # sampler exp + sigmoid head
    for i, a in enumerate(activations):
        if a in ("tanh", "sigmoid"):
            transcendentals += b_pad * dims[i + 1]
    bytes_accessed = (3 * b_pad * lat_pad * 4
                      + sum(int(p.size) * p.dtype.itemsize for p in padded_params)
                      + b_pad * out_pad * 2)

    out_padded = pl.pallas_call(
        kernel,
        out_shape=jax.ShapeDtypeStruct((b_pad, out_pad), jnp.bfloat16),
        grid=grid,
        in_specs=in_specs,
        out_specs=out_specs,
        compiler_params=pltpu.CompilerParams(
            dimension_semantics=("parallel",),
            vmem_limit_bytes=32 * 1024 * 1024,
        ),
        cost_estimate=pl.CostEstimate(
            flops=flops,
            transcendentals=transcendentals,
            bytes_accessed=bytes_accessed,
        ),
    )(mu_p, logvar_p, eps_p, *padded_params)

    # Slice the real batch rows / output columns back out; keep serving dtype bf16.
    return out_padded[:batch, :out_dim]


def init_params(key, decoder_dims, decoder_activations, common_out_dim):
    """Deterministic unpadded f32 parameters (shapes follow the PyTorch module)."""
    params = []
    dims = list(decoder_dims)
    for i in range(len(decoder_activations)):
        key, kw, kb = jax.random.split(key, 3)
        w = jax.random.normal(kw, (dims[i], dims[i + 1]), jnp.float32) / jnp.sqrt(dims[i])
        b = jax.random.normal(kb, (1, dims[i + 1]), jnp.float32) * 0.01
        params += [w, b]
    key, kw, kb = jax.random.split(key, 3)
    wc = jax.random.normal(kw, (dims[-1], common_out_dim), jnp.float32) / jnp.sqrt(dims[-1])
    bc = jax.random.normal(kb, (1, common_out_dim), jnp.float32) * 0.01
    params += [wc, bc]
    return tuple(params)


def pad_params(flat_params, activations):
    """Zero-pad every feature dim to a multiple of 128; weights bf16, biases f32."""
    n_layers = len(activations)
    padded = []
    for i in range(n_layers + 1):
        w = flat_params[2 * i]
        b = flat_params[2 * i + 1]
        din_p = _round_up(w.shape[0], LANE)
        dout_p = _round_up(w.shape[1], LANE)
        w_p = jnp.pad(w, ((0, din_p - w.shape[0]),
                          (0, dout_p - w.shape[1]))).astype(jnp.bfloat16)
        b_p = jnp.pad(b, ((0, 0), (0, dout_p - b.shape[1]))).astype(jnp.float32)
        padded += [w_p, b_p]
    return tuple(padded)


def reference_forward(x, eps, flat_params, latent_dim, activations):
    """Pure-JAX f32 reference of the same forward pass (for verification)."""
    mu, logvar = x[:, :latent_dim], x[:, latent_dim:]
    h = mu + jnp.exp(0.5 * logvar) * eps
    n_layers = len(activations)
    for i in range(n_layers):
        h = h @ flat_params[2 * i] + flat_params[2 * i + 1]
        if activations[i] == "relu":
            h = jnp.maximum(h, 0.0)
        elif activations[i] == "tanh":
            h = jnp.tanh(h)
        elif activations[i] == "sigmoid":
            h = jax.nn.sigmoid(h)
    logits = h @ flat_params[2 * n_layers] + flat_params[2 * n_layers + 1]
    return jax.nn.sigmoid(logits)


if __name__ == "__main__":
    # Small shapes consistent with the module:
    #   decoder_dims = [8, 32, 32], decoder_activations = ['relu', 'relu']
    #   decoder_common: Linear(32 -> 16) + sigmoid
    batch = 64
    decoder_dims = (8, 32, 32)
    decoder_activations = ("relu", "relu")
    common_out_dim = 16
    latent_dim = decoder_dims[0]

    key = jax.random.PRNGKey(0)
    key, kx, ke, kp = jax.random.split(key, 4)

    x = jax.random.normal(kx, (batch, 2 * latent_dim), jnp.float32)   # [mu | logvar]
    eps = jax.random.normal(ke, (batch, latent_dim), jnp.float32)     # sampler noise
    params = init_params(kp, decoder_dims, decoder_activations, common_out_dim)
    padded_params = pad_params(params, decoder_activations)

    # tm=32 -> grid=(2,) on this small batch so the batch-tiling path is exercised.
    out = decoder_forward(
        x, eps, padded_params,
        latent_dim=latent_dim,
        activations=decoder_activations,
        out_dim=common_out_dim,
        tm=32,
    )
    out = jax.block_until_ready(out)

    ref = reference_forward(x, eps, params, latent_dim, decoder_activations)
    assert out.shape == (batch, common_out_dim)
    # bf16 matmul operands + bf16 output -> widened tolerance vs f32 reference.
    assert jnp.allclose(out.astype(jnp.float32), ref, atol=3e-2, rtol=3e-2), \
        "mismatch vs JAX reference"

    print("KERNEL_OK")
</pallas_src>

<mosaic_0001>
module attributes {stable_mosaic.version = 11 : i64} {
  func.func @kernel(%arg0: i32, %arg1: memref<32x128xf32, #tpu.memory_space<vmem>>, %arg2: memref<32x128xf32, #tpu.memory_space<vmem>>, %arg3: memref<32x128xf32, #tpu.memory_space<vmem>>, %arg4: memref<128x128xbf16, #tpu.memory_space<vmem>>, %arg5: memref<1x128xf32, #tpu.memory_space<vmem>>, %arg6: memref<128x128xbf16, #tpu.memory_space<vmem>>, %arg7: memref<1x128xf32, #tpu.memory_space<vmem>>, %arg8: memref<128x128xbf16, #tpu.memory_space<vmem>>, %arg9: memref<1x128xf32, #tpu.memory_space<vmem>>, %arg10: memref<32x128xbf16, #tpu.memory_space<vmem>>) attributes {dimension_semantics = [#tpu.dimension_semantics<parallel>], iteration_bounds = array<i64: 2>, scalar_prefetch = 0 : i64, scratch_operands = 0 : i64, tpu.core_type = #tpu.core_type<tc>, window_params = [{transform_indices = @transform_0, window_bounds = array<i64: 32, 128>}, {transform_indices = @transform_1, window_bounds = array<i64: 32, 128>}, {transform_indices = @transform_2, window_bounds = array<i64: 32, 128>}, {pipeline_mode = #tpu.pipeline_mode<synchronous>, transform_indices = @transform_3, window_bounds = array<i64: 128, 128>}, {pipeline_mode = #tpu.pipeline_mode<synchronous>, transform_indices = @transform_4, window_bounds = array<i64: 1, 128>}, {pipeline_mode = #tpu.pipeline_mode<synchronous>, transform_indices = @transform_5, window_bounds = array<i64: 128, 128>}, {pipeline_mode = #tpu.pipeline_mode<synchronous>, transform_indices = @transform_6, window_bounds = array<i64: 1, 128>}, {pipeline_mode = #tpu.pipeline_mode<synchronous>, transform_indices = @transform_7, window_bounds = array<i64: 128, 128>}, {pipeline_mode = #tpu.pipeline_mode<synchronous>, transform_indices = @transform_8, window_bounds = array<i64: 1, 128>}, {transform_indices = @transform_9, window_bounds = array<i64: 32, 128>}]} {
    %c0 = arith.constant 0 : index
    %c0_0 = arith.constant 0 : index
    %0 = vector.load %arg1[%c0, %c0_0] : memref<32x128xf32, #tpu.memory_space<vmem>>, vector<32x128xf32>
    %c0_1 = arith.constant 0 : index
    %c0_2 = arith.constant 0 : index
    %1 = vector.load %arg2[%c0_1, %c0_2] : memref<32x128xf32, #tpu.memory_space<vmem>>, vector<32x128xf32>
    %cst = arith.constant 5.000000e-01 : f32
    %2 = vector.broadcast %cst : f32 to vector<32x128xf32>
    %3 = arith.mulf %2, %1 : vector<32x128xf32>
    %4 = math.exp %3 : vector<32x128xf32>
    %c0_3 = arith.constant 0 : index
    %c0_4 = arith.constant 0 : index
    %5 = vector.load %arg3[%c0_3, %c0_4] : memref<32x128xf32, #tpu.memory_space<vmem>>, vector<32x128xf32>
    %6 = arith.mulf %4, %5 : vector<32x128xf32>
    %7 = arith.addf %0, %6 : vector<32x128xf32>
    %c0_5 = arith.constant 0 : index
    %c0_6 = arith.constant 0 : index
    %8 = vector.load %arg4[%c0_5, %c0_6] : memref<128x128xbf16, #tpu.memory_space<vmem>>, vector<128x128xbf16>
    %c0_7 = arith.constant 0 : index
    %c0_8 = arith.constant 0 : index
    %9 = vector.load %arg5[%c0_7, %c0_8] : memref<1x128xf32, #tpu.memory_space<vmem>>, vector<1x128xf32>
    %10 = arith.truncf %7 : vector<32x128xf32> to vector<32x128xbf16>
    %cst_9 = arith.constant dense<0.000000e+00> : vector<32x128xf32>
    %11 = tpu.matmul %10, %8, %cst_9 {dimension_numbers = #tpu.dot_dimension_numbers<[1], [0], [0], [1], [0, 0, 1, 1], [], []>} : vector<32x128xbf16>, vector<128x128xbf16>, vector<32x128xf32> -> vector<32x128xf32>
    %12 = vector.broadcast %9 : vector<1x128xf32> to vector<32x128xf32>
    %13 = arith.addf %11, %12 : vector<32x128xf32>
    %cst_10 = arith.constant 0.000000e+00 : f32
    %14 = vector.broadcast %cst_10 : f32 to vector<32x128xf32>
    %15 = arith.maximumf %13, %14 : vector<32x128xf32>
    %c0_11 = arith.constant 0 : index
    %c0_12 = arith.constant 0 : index
    %16 = vector.load %arg6[%c0_11, %c0_12] : memref<128x128xbf16, #tpu.memory_space<vmem>>, vector<128x128xbf16>
    %c0_13 = arith.constant 0 : index
    %c0_14 = arith.constant 0 : index
    %17 = vector.load %arg7[%c0_13, %c0_14] : memref<1x128xf32, #tpu.memory_space<vmem>>, vector<1x128xf32>
    %18 = arith.truncf %15 : vector<32x128xf32> to vector<32x128xbf16>
    %cst_15 = arith.constant dense<0.000000e+00> : vector<32x128xf32>
    %19 = tpu.matmul %18, %16, %cst_15 {dimension_numbers = #tpu.dot_dimension_numbers<[1], [0], [0], [1], [0, 0, 1, 1], [], []>} : vector<32x128xbf16>, vector<128x128xbf16>, vector<32x128xf32> -> vector<32x128xf32>
    %20 = vector.broadcast %17 : vector<1x128xf32> to vector<32x128xf32>
    %21 = arith.addf %19, %20 : vector<32x128xf32>
    %cst_16 = arith.constant 0.000000e+00 : f32
    %22 = vector.broadcast %cst_16 : f32 to vector<32x128xf32>
    %23 = arith.maximumf %21, %22 : vector<32x128xf32>
    %c0_17 = arith.constant 0 : index
    %c0_18 = arith.constant 0 : index
    %24 = vector.load %arg8[%c0_17, %c0_18] : memref<128x128xbf16, #tpu.memory_space<vmem>>, vector<128x128xbf16>
    %c0_19 = arith.constant 0 : index
    %c0_20 = arith.constant 0 : index
    %25 = vector.load %arg9[%c0_19, %c0_20] : memref<1x128xf32, #tpu.memory_space<vmem>>, vector<1x128xf32>
    %26 = arith.truncf %23 : vector<32x128xf32> to vector<32x128xbf16>
    %cst_21 = arith.constant dense<0.000000e+00> : vector<32x128xf32>
    %27 = tpu.matmul %26, %24, %cst_21 {dimension_numbers = #tpu.dot_dimension_numbers<[1], [0], [0], [1], [0, 0, 1, 1], [], []>} : vector<32x128xbf16>, vector<128x128xbf16>, vector<32x128xf32> -> vector<32x128xf32>
    %28 = vector.broadcast %25 : vector<1x128xf32> to vector<32x128xf32>
    %29 = arith.addf %27, %28 : vector<32x128xf32>
    %30 = arith.negf %29 : vector<32x128xf32>
    %31 = math.exp %30 : vector<32x128xf32>
    %cst_22 = arith.constant 1.000000e+00 : f32
    %32 = vector.broadcast %cst_22 : f32 to vector<32x128xf32>
    %33 = arith.addf %32, %31 : vector<32x128xf32>
    %34 = arith.divf %32, %33 : vector<32x128xf32>
    %35 = arith.truncf %34 : vector<32x128xf32> to vector<32x128xbf16>
    %c0_23 = arith.constant 0 : index
    %c0_24 = arith.constant 0 : index
    %36 = vector.load %arg10[%c0_23, %c0_24] : memref<32x128xbf16, #tpu.memory_space<vmem>>, vector<32x128xbf16>
    tpu.vector_store %arg10[%c0_23, %c0_24], %35 {strides = array<i32>} : memref<32x128xbf16, #tpu.memory_space<vmem>>, vector<32x128xbf16>,
    return
  }
  func.func @transform_0(%arg0: i32) -> (i32, i32) {
    %c0_i32 = arith.constant 0 : i32
    %c0_i32_0 = arith.constant 0 : i32
    return %arg0, %c0_i32 : i32, i32
  }
  func.func @transform_1(%arg0: i32) -> (i32, i32) {
    %c0_i32 = arith.constant 0 : i32
    %c0_i32_0 = arith.constant 0 : i32
    return %arg0, %c0_i32 : i32, i32
  }
  func.func @transform_2(%arg0: i32) -> (i32, i32) {
    %c0_i32 = arith.constant 0 : i32
    %c0_i32_0 = arith.constant 0 : i32
    return %arg0, %c0_i32 : i32, i32
  }
  func.func @transform_3(%arg0: i32) -> (i32, i32) {
    %c0_i32 = arith.constant 0 : i32
    %c0_i32_0 = arith.constant 0 : i32
    %c0_i32_1 = arith.constant 0 : i32
    return %c0_i32, %c0_i32_0 : i32, i32
  }
  func.func @transform_4(%arg0: i32) -> (i32, i32) {
    %c0_i32 = arith.constant 0 : i32
    %c0_i32_0 = arith.constant 0 : i32
    %c0_i32_1 = arith.constant 0 : i32
    return %c0_i32, %c0_i32_0 : i32, i32
  }
  func.func @transform_5(%arg0: i32) -> (i32, i32) {
    %c0_i32 = arith.constant 0 : i32
    %c0_i32_0 = arith.constant 0 : i32
    %c0_i32_1 = arith.constant 0 : i32
    return %c0_i32, %c0_i32_0 : i32, i32
  }
  func.func @transform_6(%arg0: i32) -> (i32, i32) {
    %c0_i32 = arith.constant 0 : i32
    %c0_i32_0 = arith.constant 0 : i32
    %c0_i32_1 = arith.constant 0 : i32
    return %c0_i32, %c0_i32_0 : i32, i32
  }
  func.func @transform_7(%arg0: i32) -> (i32, i32) {
    %c0_i32 = arith.constant 0 : i32
    %c0_i32_0 = arith.constant 0 : i32
    %c0_i32_1 = arith.constant 0 : i32
    return %c0_i32, %c0_i32_0 : i32, i32
  }
  func.func @transform_8(%arg0: i32) -> (i32, i32) {
    %c0_i32 = arith.constant 0 : i32
    %c0_i32_0 = arith.constant 0 : i32
    %c0_i32_1 = arith.constant 0 : i32
    return %c0_i32, %c0_i32_0 : i32, i32
  }
  func.func @transform_9(%arg0: i32) -> (i32, i32) {
    %c0_i32 = arith.constant 0 : i32
    %c0_i32_0 = arith.constant 0 : i32
    return %arg0, %c0_i32 : i32, i32
  }
}

</mosaic_0001>

<bundles_post_ra>
// kernel: decoder_forward.1
= control target key start
LH: loop header
LB: loop body
LE: loop exit
PB: predicated region body
PF: predicated region fallthrough
CT: control target
= control target key end

     0   :  { %s1180_s30 = smov 0   ;;  %s1293_s0 = inlined_call_operand.vmem [shape: f32[64,128], index: 0, kind: input, shape index: {}]   ;;  %s1294_s1 = inlined_call_operand.vmem [shape: f32[64,128], index: 1, kind: input, shape index: {}]   ;;  %s1295_s2 = inlined_call_operand.vmem [shape: f32[64,128], index: 2, kind: input, shape index: {}]   ;;  %s1296_s3 = inlined_call_operand.vmem [shape: bf16[128,128], index: 3, kind: input, shape index: {}]   ;;  %s1297_s4 = inlined_call_operand.vmem [shape: f32[1,128], index: 4, kind: input, shape index: {}]   ;;  %s1298_s5 = inlined_call_operand.vmem [shape: bf16[128,128], index: 5, kind: input, shape index: {}]   ;;  %s1299_s6 = inlined_call_operand.vmem [shape: f32[1,128], index: 6, kind: input, shape index: {}]   ;;  %s1300_s7 = inlined_call_operand.vmem [shape: bf16[128,128], index: 7, kind: input, shape index: {}]   ;;  %s1301_s8 = inlined_call_operand.vmem [shape: f32[1,128], index: 8, kind: input, shape index: {}]   ;;  %s1302_s9 = inlined_call_operand.vmem [shape: bf16[64,128], index: 9, kind: output, shape index: {}]  }
   0x1 LB: > { %s911_s10 = sadd.s32 4294967295, %s1128_s30   ;;  %p915_p0 = scmp.ge.s32.totalorder %s1128_s30, 1  ;;  %s1128_s30 = sphi %s1180_s30, %s19_s30  }
   0x2   : > { %p310_p1 = scmp.lt.s32.totalorder %s1128_s30, 3 }
   0x4   : > { %p311_p2 = pnand %p915_p0, %p310_p1 }
   0x5   : > { %v1074_v0 = vld [vmem:[%s1296_s3] sm:$0xff] (!%p311_p2)   ;;  %s916_s13 = sshll.u32 (!%p311_p2), %s911_s10, 2  ;;  %v1075_v1 = vld [vmem:[%s1296_s3 + $0x8] sm:$0xff] (!%p311_p2)   ;;  %v1076_v2 = vld [vmem:[%s1296_s3 + $0x10] sm:$0xff] (!%p311_p2)  }
   0x6   : > { %314 = sbr.rel (%p311_p2) target bundleno = 731 (0x2db), region = 56  ;;  %p357_p3 = scmp.lt.s32.totalorder (!%p311_p2), %s916_s13, 7  ;;  %1006 = vmatprep.subr.bf16.mxu0 (!%p311_p2), %v1074_v0  ;;  %v1077_v3 = vld [vmem:[%s1296_s3 + $0x18] sm:$0xff] (!%p311_p2)   ;;  %v1078_v12 = vld [vmem:[%s1296_s3 + $0x20] sm:$0xff] (!%p311_p2)   ;;  %v1083_v18 = vld [vmem:[%s1298_s5 + $0x8] sm:$0xff] (!%p311_p2)  }
   0x7   : > { %1007 = vmatpush3.bf16.msra.mxu0 (!%p311_p2), %v1074_v0  ;;  %v1082_v17 = vld [vmem:[%s1298_s5] sm:$0xff] (!%p311_p2)   ;;  %v1079_v19 = vld [vmem:[%s1296_s3 + $0x28] sm:$0xff] (!%p311_p2)   ;;  %v1084_v20 = vld [vmem:[%s1298_s5 + $0x10] sm:$0xff] (!%p311_p2)  }
   0x8   : > { %1008 = vmatprep.subr.bf16.mxu0 (!%p311_p2), %v1075_v1  ;;  %1026 = vmatprep.subr.bf16.mxu1 (!%p311_p2), %v1082_v17  ;;  %v1080_v21 = vld [vmem:[%s1296_s3 + $0x30] sm:$0xff] (!%p311_p2)   ;;  %v1085_v23 = vld [vmem:[%s1298_s5 + $0x18] sm:$0xff] (!%p311_p2)   ;;  %v1086_v36 = vld [vmem:[%s1298_s5 + $0x20] sm:$0xff] (!%p311_p2)  }
   0x9   : > { %1027 = vmatpush3.bf16.msra.mxu1 (!%p311_p2), %v1082_v17  ;;  %v1081_v27 = vld [vmem:[%s1296_s3 + $0x38] sm:$0xff] (!%p311_p2)   ;;  %v1087_v46 = vld [vmem:[%s1298_s5 + $0x28] sm:$0xff] (!%p311_p2)   ;;  %v1088_v48 = vld [vmem:[%s1298_s5 + $0x30] sm:$0xff] (!%p311_p2)  }
   0xa   : > { %1028 = vmatprep.subr.bf16.mxu1 (!%p311_p2), %v1083_v18  ;;  %v1089_v49 = vld [vmem:[%s1298_s5 + $0x38] sm:$0xff] (!%p311_p2)   ;;  %v1090_v50 = vld [vmem:[%s1300_s7] sm:$0xff] (!%p311_p2)   ;;  %v1091_v51 = vld [vmem:[%s1300_s7 + $0x8] sm:$0xff] (!%p311_p2)  }
   0xb   : > { %1009 = vmatpush3.bf16.msra.mxu0 (!%p311_p2), %v1075_v1  ;;  %v1092_v52 = vld [vmem:[%s1300_s7 + $0x10] sm:$0xff] (!%p311_p2)   ;;  %v1093_v53 = vld [vmem:[%s1300_s7 + $0x18] sm:$0xff] (!%p311_p2)   ;;  %v1094_v54 = vld [vmem:[%s1300_s7 + $0x20] sm:$0xff] (!%p311_p2)  }
   0xc   : > { %1010 = vmatprep.subr.bf16.mxu0 (!%p311_p2), %v1076_v2  ;;  %v1095_v55 = vld [vmem:[%s1300_s7 + $0x28] sm:$0xff] (!%p311_p2)   ;;  %v924_v56 = vld [vmem:[%s1297_s4] ss:$0 sm:$0xff] (!%p311_p2) }
   0xd   : > { %s1304_s13 = smov (!%p357_p3, %s916_s13), 7  ;;  %1029 = vmatpush3.bf16.msra.mxu1 %v1083_v18 }
   0xe   : > { %s1200_s18 = sshll.u32 %s1304_s13, 3  ;;  %1030 = vmatprep.subr.bf16.mxu1 %v1084_v20  ;;  %s923_s20 = sshll.u32 %s1304_s13, 2 }
   0xf   : > { %s366_s21 = scalar_lea.vmem %s1294_s1, %s1200_s18  ;;  %1011 = vmatpush3.bf16.msra.mxu0 %v1076_v2  ;;  %s372_s15 = scalar_lea.vmem %s1295_s2, %s1200_s18 }
  0x10   : > { %v385_v4 = vld [vmem:[%s366_s21] sm:$0xff]  ;;  %v386_v5 = vld [vmem:[%s366_s21 + $0x8] sm:$0xff]  ;;  %v387_v6 = vld [vmem:[%s366_s21 + $0x10] sm:$0xff]  ;;  %1012 = vmatprep.subr.bf16.mxu0 %v1077_v3  ;;  %s360_s23 = scalar_lea.vmem %s1293_s0, %s1200_s18 }
  0x11   : > { %v388_v7 = vld [vmem:[%s366_s21 + $0x18] sm:$0xff]  ;;  %v389_v8 = vmul.f32 0.5, %v385_v4  ;;  %v390_v9 = vmul.f32 0.5, %v386_v5  ;;  %v391_v10 = vmul.f32 0.5, %v387_v6  ;;  %v401_v22 = vld [vmem:[%s372_s15] sm:$0xff]  ;;  %v402_v24 = vld [vmem:[%s372_s15 + $0x8] sm:$0xff]  ;;  %1031 = vmatpush3.bf16.msra.mxu1 %v1084_v20 }
  0x12   : > { %v392_v11 = vmul.f32 0.5, %v388_v7  ;;  %v381_v25 = vld [vmem:[%s360_s23] sm:$0xff]  ;;  %v403_v26 = vld [vmem:[%s372_s15 + $0x10] sm:$0xff]  ;;  %v382_v28 = vld [vmem:[%s360_s23 + $0x8] sm:$0xff]  ;;  %1032 = vmatprep.subr.bf16.mxu1 %v1085_v23 }
  0x13   : > { %v393_v13 = vmul.f32 1.442695, %v389_v8  ;;  %v395_v14 = vmul.f32 1.442695, %v390_v9  ;;  %v397_v15 = vmul.f32 1.442695, %v391_v10  ;;  %1013 = vmatpush3.bf16.msra.mxu0 %v1077_v3 }
  0x14   : > { %v399_v16 = vmul.f32 1.442695, %v392_v11  ;;  %1014 = vmatprep.subr.bf16.mxu0 %v1078_v12  ;;  %v404_v29 = vld [vmem:[%s372_s15 + $0x18] sm:$0xff]  ;;  %v383_v31 = vld [vmem:[%s360_s23 + $0x10] sm:$0xff]  ;;  %v933_v9 = vld [vmem:[%s1299_s6] ss:$0 sm:$0xff] }
  0x15   : > { %1098 = vpow2.f32 %v393_v13  ;;  %v384_v39 = vld [vmem:[%s360_s23 + $0x18] sm:$0xff]  ;;  %1033 = vmatpush3.bf16.msra.mxu1 %v1085_v23  ;;  %v1096_v7 = vld [vmem:[%s1300_s7 + $0x30] sm:$0xff]   ;;  %s378_s23 = scalar_lea.vmem %s1302_s9, %s923_s20 }
  0x16   : > { %1100 = vpow2.f32 %v395_v14  ;;  %1034 = vmatprep.subr.bf16.mxu1 %v1086_v36  ;;  %v1097_v8 = vld [vmem:[%s1300_s7 + $0x38] sm:$0xff]  }
  0x17   : > { %1102 = vpow2.f32 %v397_v15  ;;  %1015 = vmatpush3.bf16.msra.mxu0 %v1078_v12 }
  0x18   : > { %1104 = vpow2.f32 %v399_v16  ;;  %1016 = vmatprep.subr.bf16.mxu0 %v1079_v19 }
  0x19   : > { %1035 = vmatpush3.bf16.msra.mxu1 %v1086_v36 }
  0x1a   : > { %1036 = vmatprep.subr.bf16.mxu1 %v1087_v46 }
  0x1b   : > { %1017 = vmatpush3.bf16.msra.mxu0 %v1079_v19 }
  0x1c   : > { %1018 = vmatprep.subr.bf16.mxu0 %v1080_v21 }
  0x1d   : > { %1037 = vmatpush3.bf16.msra.mxu1 %v1087_v46 }
  0x1e   : > { %1038 = vmatprep.subr.bf16.mxu1 %v1088_v48 }
  0x1f   : > { %v1099_v30 = vpop.eup %1098  ;;  %1019 = vmatpush3.bf16.msra.mxu0 %v1080_v21 }
  0x20   : > { %v1101_v32 = vpop.eup %1100  ;;  %v405_v33 = vmul.f32 %v1099_v30, %v401_v22  ;;  %1020 = vmatprep.subr.bf16.mxu0 %v1081_v27 }
  0x21   : > { %v1103_v34 = vpop.eup %1102  ;;  %v406_v35 = vmul.f32 %v1101_v32, %v402_v24  ;;  %1039 = vmatpush3.bf16.msra.mxu1 %v1088_v48  ;;  %v942_v24 = vld [vmem:[%s1301_s8] ss:$0 sm:$0xff] }
  0x22   : > { %v1105_v37 = vpop.eup %1104  ;;  %v409_v38 = vadd.f32 %v405_v33, %v381_v25  ;;  %v407_v40 = vmul.f32 %v1103_v34, %v403_v26  ;;  %1040 = vmatprep.subr.bf16.mxu1 %v1089_v49 }
  0x23   : > { %v410_v41 = vadd.f32 %v406_v35, %v382_v28  ;;  %v408_v42 = vmul.f32 %v1105_v37, %v404_v29  ;;  %1021 = vmatpush3.bf16.msra.mxu0 %v1081_v27 }
  0x24   : > { %v411_v43 = vadd.f32 %v407_v40, %v383_v31  ;;  %1046 = vmatprep.subr.bf16.mxu0 %v1090_v50 }
  0x25   : > { %v430_v44 = vpack.c.bf16 %v410_v41, %v409_v38  ;;  %v412_v45 = vadd.f32 %v408_v42, %v384_v39  ;;  %1041 = vmatpush3.bf16.msra.mxu1 %v1089_v49 }
  0x27   : > { %1022 = vmatprep.mubr.bf16.mxu0 %v430_v44  ;;  %v431_v47 = vpack.c.bf16 %v412_v45, %v411_v43 }
  0x29   : > { %1023 = vmatmul.mubr.bf16.vlgmr.msra.gmra.mrb[0].mxu0 %v431_v47 }
  0x2a   : > { %1047 = vmatpush3.bf16.msra.mxu0 %v1090_v50 }
  0x2b   : > { %1048 = vmatprep.subr.bf16.mxu0 %v1091_v51 }
  0x2e   : > { %1049 = vmatpush3.bf16.msra.mxu0 %v1091_v51 }
  0x2f   : > { %1050 = vmatprep.subr.bf16.mxu0 %v1092_v52 }
  0x32   : > { %1051 = vmatpush3.bf16.msra.mxu0 %v1092_v52 }
  0x33   : > { %1052 = vmatprep.subr.bf16.mxu0 %v1093_v53 }
  0x36   : > { %1053 = vmatpush3.bf16.msra.mxu0 %v1093_v53 }
  0x37   : > { %1054 = vmatprep.subr.bf16.mxu0 %v1094_v54 }
  0x3a   : > { %1055 = vmatpush3.bf16.msra.mxu0 %v1094_v54 }
  0x3b   : > { %1056 = vmatprep.subr.bf16.mxu0 %v1095_v55 }
  0x3e   : > { %1057 = vmatpush3.bf16.msra.mxu0 %v1095_v55 }
  0x3f   : > { %1058 = vmatprep.subr.bf16.mxu0 %v1096_v7 }
  0x42   : > { %1059 = vmatpush3.bf16.msra.mxu0 %v1096_v7 }
  0x43   : > { %1060 = vmatprep.subr.bf16.mxu0 %v1097_v8 }
  0x46   : > { %1061 = vmatpush3.bf16.msra.mxu0 %v1097_v8 }
  0xfc   : > { %v1024_v57 = vpop.f32.mrb[0].mxu0 }
  0xfd   : > { %v529_v58 = vadd.f32 %v1024_v57, %v924_v56  ;;  %v520_v59 = vpop.f32.mrb[1].mxu0 }
  0xfe   : > { %v521_v60 = vadd.f32 %v924_v56, %v520_v59  ;;  %v1025_v61 = vpop.f32.mrb[2].mxu0 }
  0xff   : > { %v532_v62 = vadd.f32 %v1025_v61, %v924_v56  ;;  %v523_v63 = vpop.f32.mrb[3].mxu0  ;;  %v537_v1 = vmax.f32 %v529_v58, 0.0 }
 0x100   : > { %v524_v0 = vadd.f32 %v924_v56, %v523_v63  ;;  %v535_v3 = vmax.f32 %v521_v60, 0.0 }
 0x101   : > { %v538_v2 = vmax.f32 %v532_v62, 0.0 }
 0x102   : > { %v536_v4 = vmax.f32 %v524_v0, 0.0 }
 0x103   : > { %v557_v5 = vpack.c.bf16 %v538_v2, %v537_v1 }
 0x104   : > { %v556_v6 = vpack.c.bf16 %v536_v4, %v535_v3 }
 0x106   : > { %1042 = vmatprep.mubr.bf16.mxu1 %v556_v6 }
 0x107   : > { %1043 = vmatmul.mubr.bf16.vlgmr.msra.gmra.mrb[0].mxu1 %v557_v5 }
 0x1da   : > { %v1044_v10 = vpop.f32.mrb[0].mxu1 }
 0x1db   : > { %v655_v11 = vadd.f32 %v1044_v10, %v933_v9  ;;  %v646_v12 = vpop.f32.mrb[1].mxu1 }
 0x1dc   : > { %v647_v13 = vadd.f32 %v933_v9, %v646_v12  ;;  %v1045_v14 = vpop.f32.mrb[2].mxu1 }
 0x1dd   : > { %v658_v15 = vadd.f32 %v1045_v14, %v933_v9  ;;  %v649_v16 = vpop.f32.mrb[3].mxu1  ;;  %v663_v18 = vmax.f32 %v655_v11, 0.0 }
 0x1de   : > { %v650_v17 = vadd.f32 %v933_v9, %v649_v16  ;;  %v661_v20 = vmax.f32 %v647_v13, 0.0 }
 0x1df   : > { %v664_v19 = vmax.f32 %v658_v15, 0.0 }
 0x1e0   : > { %v662_v21 = vmax.f32 %v650_v17, 0.0 }
 0x1e1   : > { %v683_v22 = vpack.c.bf16 %v664_v19, %v663_v18 }
 0x1e2   : > { %v682_v23 = vpack.c.bf16 %v662_v21, %v661_v20 }
 0x1e4   : > { %1062 = vmatprep.mubr.bf16.mxu0 %v682_v23 }
 0x1e5   : > { %1063 = vmatmul.mubr.bf16.vlgmr.msra.gmra.mrb[4].mxu0 %v683_v22 }
 0x2b8   : > { %v1064_v25 = vpop.f32.mrb[4].mxu0 }
 0x2b9   : > { %v781_v26 = vadd.f32 %v1064_v25, %v942_v24  ;;  %v772_v27 = vpop.f32.mrb[5].mxu0 }
 0x2ba   : > { %v773_v28 = vadd.f32 %v942_v24, %v772_v27  ;;  %v1065_v29 = vpop.f32.mrb[6].mxu0 }
 0x2bb   : > { %v953_v30 = vmul.f32 -1.442695, %v781_v26  ;;  %v784_v31 = vadd.f32 %v1065_v29, %v942_v24  ;;  %v775_v32 = vpop.f32.mrb[7].mxu0 }
 0x2bc   : > { %v951_v33 = vmul.f32 -1.442695, %v773_v28  ;;  %v776_v34 = vadd.f32 %v942_v24, %v775_v32 }
 0x2bd   : > { %1106 = vpow2.f32 %v953_v30  ;;  %v954_v35 = vmul.f32 -1.442695, %v784_v31 }
 0x2be   : > { %1108 = vpow2.f32 %v951_v33  ;;  %v952_v36 = vmul.f32 -1.442695, %v776_v34 }
 0x2bf   : > { %1110 = vpow2.f32 %v954_v35 }
 0x2c0   : > { %1112 = vpow2.f32 %v952_v36 }
 0x2c7   : > { %v1107_v37 = vpop.eup %1106 }
 0x2c8   : > { %v1109_v38 = vpop.eup %1108  ;;  %v801_v39 = vadd.f32 1.0, %v1107_v37 }
 0x2c9   : > { %v1111_v40 = vpop.eup %1110  ;;  %v799_v41 = vadd.f32 1.0, %v1109_v38 }
 0x2ca   : > { %v1113_v42 = vpop.eup %1112  ;;  %1114 = vrcp.f32 %v801_v39  ;;  %v802_v43 = vadd.f32 1.0, %v1111_v40 }
 0x2cb   : > { %1116 = vrcp.f32 %v799_v41  ;;  %v800_v44 = vadd.f32 1.0, %v1113_v42 }
 0x2cc   : > { %1118 = vrcp.f32 %v802_v43 }
 0x2cd   : > { %1120 = vrcp.f32 %v800_v44 }
 0x2d4   : > { %v1115_v45 = vpop.eup %1114 }
 0x2d5   : > { %v1117_v46 = vpop.eup %1116 }
 0x2d6   : > { %v1119_v47 = vpop.eup %1118 }
 0x2d7   : > { %v1121_v48 = vpop.eup %1120  ;;  %v973_v49 = vpack.c.bf16 %v1119_v47, %v1115_v45 }
 0x2d8   : > { %v968_v50 = vpack.c.bf16 %v1121_v48, %v1117_v46 }
 0x2d9   : > { %975 = vst [vmem:[%s378_s23 + $0x8] sm:$0xff] %v973_v49  }
 0x2da   : > { %969 = vst [vmem:[%s378_s23] sm:$0xff] %v968_v50  }
 0x2db PF: > { %s19_s30 = sadd.s32 1, %s1128_s30  }
 0x2dc   : > { %p16_p4 = scmp.ge.s32.totalorder %s19_s30, 4  }
 0x2de   :  { %18 = sbr.rel (!%p16_p4) target bundleno = 1 (0x1), region = 92 }

</bundles_post_ra>
